<compile_context>
chip_gen: v5e
topology: v5e:2x2
jax: 0.10.0
libtpu: 0.0.40
codegen_flags: <defaults>
</compile_context>

<pallas_src>
import functools

import jax
import jax.numpy as jnp
from jax import lax
from jax.experimental import pallas as pl
from jax.experimental.pallas import tpu as pltpu

_LANE = 128


def _round_up(x, m):
    return (x + m - 1) // m * m


def _apply_nonlin(x, nonlin):
    if nonlin == "sigmoid":
        return jax.nn.sigmoid(x)          # EUP path
    if nonlin == "relu":
        return jnp.maximum(x, 0.0)
    if nonlin == "tanh":
        return jnp.tanh(x)                # EUP path
    if nonlin == "relu6":
        return jnp.clip(x, 0.0, 6.0)
    return x                              # 'linear'


def _rnn_seq_kernel(px_ref, h0_ref, i0_ref, wh_ref, *refs,
                    one_minus_alpha, nonlin, tt, emit_i):
    """One TIME BLOCK (TT steps) per grid iteration; h/i carried in VMEM.

    px_ref : (TT, B, Hp) streamed  alpha*(x-proj + noise + bias), lane-padded
    h0_ref : (B, Hp)     resident  initial hidden state      (Buffered(1))
    i0_ref : (B, Hp)     resident  initial membrane potential(Buffered(1))
    wh_ref : (Hp, Hp)    resident  alpha_s * W_h2h, zero-pad (Buffered(1))
    outputs: h_seq (TT,B,Hp) [, i_seq (TT,B,Hp) if emit_i]
    scratch: h carry (B,Hp), i carry (B,Hp)
    """
    if emit_i:
        h_seq_ref, i_seq_ref, h_sc, i_sc = refs
    else:
        h_seq_ref, h_sc, i_sc = refs
        i_seq_ref = None

    @pl.when(pl.program_id(0) == 0)
    def _():
        h_sc[...] = h0_ref[...]
        i_sc[...] = i0_ref[...]

    def step(t, carry):
        # Serial recurrent projection only (MXU, f32 accumulate).
        pre = jnp.dot(h_sc[...].astype(wh_ref.dtype), wh_ref[...],
                      preferred_element_type=jnp.float32)
        # alpha_s already folded into wh / px:
        #   i = (1-alpha)*i_prev + alpha*(i2h + h2h + o2h + bias + noise)
        i_new = one_minus_alpha * i_sc[...] + pre + px_ref[t]
        h_new = _apply_nonlin(i_new, nonlin)
        i_sc[...] = i_new
        h_sc[...] = h_new
        h_seq_ref[t] = h_new
        if i_seq_ref is not None:
            i_seq_ref[t] = i_new
        return carry

    lax.fori_loop(0, tt, step, 0, unroll=True)


@functools.partial(
    jax.jit,
    static_argnames=("alpha_s", "nonlin", "time_block", "return_i",
                     "trim_output", "mxu_dtype"))
def rnn_cell_sequence(data_seq, feedback_seq, noise_seq, h0, i0,
                      w_i2h, w_h2h, w_o2h, b_h2h, *, alpha_s,
                      nonlin="sigmoid", time_block=None, return_i=True,
                      trim_output=True, mxu_dtype=None):
    """Run the cell over a sequence; serial recurrence lives inside one kernel.

    data_seq:     (T, B, D) f32
    feedback_seq: (T, B, O) f32   (feedback from previous timestep, given)
    noise_seq:    (T, B, H) f32   (already scaled by noise_std)
    h0, i0:       (B, H)    f32
    w_i2h: (D, H), w_h2h: (H, H), w_o2h: (O, H)   pre-transposed (x @ W)
    b_h2h: (1, H)
    returns (h_seq, i_seq) each (T, B, H), or h_seq only if return_i=False.
    """
    T, B, D = data_seq.shape
    O = feedback_seq.shape[-1]
    H = h0.shape[-1]
    Hp = _round_up(H, _LANE)                 # lane-dense output stores
    alpha = jnp.float32(alpha_s)

    tt = int(time_block) if time_block is not None else max(1, min(16, T))
    T_pad = _round_up(T, tt)
    n_tblocks = T_pad // tt

    # ---- hoisted non-recurrent projection: ONE batched matmul (plain XLA) ----
    xf = jnp.concatenate([data_seq, feedback_seq], axis=-1)           # (T,B,K)
    wx = jnp.concatenate([w_i2h, w_o2h], axis=0)                      # (K,H)
    proj = jnp.einsum("tbk,kh->tbh", xf, wx,
                      preferred_element_type=jnp.float32)             # (T,B,H)
    px = alpha * (proj + noise_seq + b_h2h[None])                     # (T,B,H)
    px = jnp.pad(px, ((0, T_pad - T), (0, 0), (0, Hp - H)))           # padded

    # ---- resident recurrent weight + initial state, lane-padded ----
    wh = jnp.pad(alpha * w_h2h, ((0, Hp - H), (0, Hp - H)))           # (Hp,Hp)
    if mxu_dtype is not None:
        wh = wh.astype(mxu_dtype)
    h0p = jnp.pad(h0, ((0, 0), (0, Hp - H)))
    i0p = jnp.pad(i0, ((0, 0), (0, Hp - H)))

    kernel = functools.partial(_rnn_seq_kernel,
                               one_minus_alpha=float(1.0 - alpha_s),
                               nonlin=nonlin, tt=tt, emit_i=return_i)

    seq_spec = pl.BlockSpec((tt, B, Hp), lambda t: (t, 0, 0))
    resident = functools.partial(pl.BlockSpec, pipeline_mode=pl.Buffered(1))

    out_shape = [jax.ShapeDtypeStruct((T_pad, B, Hp), jnp.float32)]
    out_specs = [seq_spec]
    if return_i:
        out_shape.append(jax.ShapeDtypeStruct((T_pad, B, Hp), jnp.float32))
        out_specs.append(seq_spec)

    # ---- explicit VMEM budget (with headroom), capped at v7x physical ----
    f32b = 4
    blk = tt * B * Hp * f32b
    stream_bytes = 2 * blk                                  # px double-buffered
    out_bytes = len(out_shape) * 2 * blk                    # outputs dbl-buffered
    resident_bytes = 2 * B * Hp * f32b + Hp * Hp * jnp.dtype(wh.dtype).itemsize
    scratch_bytes = 2 * B * Hp * f32b
    vmem_budget = int(1.5 * (stream_bytes + out_bytes
                             + resident_bytes + scratch_bytes))
    vmem_budget = min(max(vmem_budget, 16 << 20), 64 << 20)

    grid_spec = pltpu.PrefetchScalarGridSpec(
        num_scalar_prefetch=0,
        grid=(n_tblocks,),
        in_specs=[
            seq_spec,                                 # streamed px[t-block]
            resident((B, Hp), lambda t: (0, 0)),      # h0   (single-buffered)
            resident((B, Hp), lambda t: (0, 0)),      # i0   (single-buffered)
            resident((Hp, Hp), lambda t: (0, 0)),     # alpha*W_h2h (resident)
        ],
        out_specs=tuple(out_specs),
        scratch_shapes=[pltpu.VMEM((B, Hp), jnp.float32),   # h carry
                        pltpu.VMEM((B, Hp), jnp.float32)],  # i carry
    )

    outs = pl.pallas_call(
        kernel,
        out_shape=tuple(out_shape),
        grid_spec=grid_spec,
        compiler_params=pltpu.CompilerParams(
            dimension_semantics=("arbitrary",),       # serial over time blocks
            vmem_limit_bytes=vmem_budget),
    )(px, h0p, i0p, wh)

    if trim_output:
        outs = tuple(o[:T, :, :H] for o in outs)
    if return_i:
        return outs[0], outs[1]
    return outs[0]


def rnn_cell_forward(data, h_prev, feedback, i_prev, noise,
                     w_i2h, w_h2h, w_o2h, b_h2h, *, alpha_s,
                     nonlin="sigmoid"):
    """Module-equivalent single step: returns (h, i), each (B, H)."""
    h_seq, i_seq = rnn_cell_sequence(
        data[None], feedback[None], noise[None], h_prev, i_prev,
        w_i2h, w_h2h, w_o2h, b_h2h, alpha_s=alpha_s, nonlin=nonlin,
        time_block=1)
    return h_seq[0], i_seq[0]


if __name__ == "__main__":
    # Hyperparameters (synthetic, deterministic).
    batch = 8
    data_size = 16
    hidden_size = 32
    output_size = 8
    seq_len = 8
    noise_std = 0.1
    alpha_s = 0.5
    bias = True
    nonlin = "sigmoid"

    key = jax.random.PRNGKey(0)
    (k_wi, k_wh, k_wo, k_b,
     k_data, k_h, k_fb, k_i, k_noise) = jax.random.split(key, 9)

    # Parameter init mirrors the module's __init__ (stored transposed):
    #   h2h.weight ~ U(-0.5, 0.5), i2h.weight ~ U(-1, 1), o2h.weight ~ U(-1, 1)
    #   h2h.bias default PyTorch Linear init: U(-1/sqrt(H), 1/sqrt(H))
    w_i2h = jax.random.uniform(k_wi, (data_size, hidden_size),
                               jnp.float32, -1.0, 1.0)
    w_h2h = jax.random.uniform(k_wh, (hidden_size, hidden_size),
                               jnp.float32, -0.5, 0.5)
    w_o2h = jax.random.uniform(k_wo, (output_size, hidden_size),
                               jnp.float32, -1.0, 1.0)
    bound = 1.0 / float(hidden_size) ** 0.5
    b_h2h = (jax.random.uniform(k_b, (1, hidden_size), jnp.float32,
                                -bound, bound)
             if bias else jnp.zeros((1, hidden_size), jnp.float32))

    # Inputs: a whole sequence (feedback at each step supplied by the caller,
    # as in the PyTorch usage).  torch.randn noise is pre-generated here.
    data_seq = jax.random.normal(k_data, (seq_len, batch, data_size),
                                 jnp.float32)
    feedback_seq = jax.random.normal(k_fb, (seq_len, batch, output_size),
                                     jnp.float32)
    noise_seq = noise_std * jax.random.normal(
        k_noise, (seq_len, batch, hidden_size), jnp.float32)
    h0 = jax.random.uniform(k_h, (batch, hidden_size), jnp.float32)
    i0 = jax.random.normal(k_i, (batch, hidden_size), jnp.float32)

    # --- sequence kernel (time loop blocked inside the kernel, state in VMEM) ---
    h_seq, i_seq = rnn_cell_sequence(data_seq, feedback_seq, noise_seq,
                                     h0, i0, w_i2h, w_h2h, w_o2h, b_h2h,
                                     alpha_s=alpha_s, nonlin=nonlin)
    jax.block_until_ready((h_seq, i_seq))

    # --- h-only / padded-output fast path (halved writeback, no slice copy) ---
    h_only = rnn_cell_sequence(data_seq, feedback_seq, noise_seq,
                               h0, i0, w_i2h, w_h2h, w_o2h, b_h2h,
                               alpha_s=alpha_s, nonlin=nonlin,
                               return_i=False, trim_output=False)
    jax.block_until_ready(h_only)

    # --- module-equivalent single step ---
    h1, i1 = rnn_cell_forward(data_seq[0], h0, feedback_seq[0], i0,
                              noise_seq[0], w_i2h, w_h2h, w_o2h, b_h2h,
                              alpha_s=alpha_s, nonlin=nonlin)
    jax.block_until_ready((h1, i1))

    # --- pure-JAX reference (un-folded, mirrors the PyTorch forward) ---
    def ref_step(data, h_prev, feedback, i_prev, noise):
        pre = data @ w_i2h + h_prev @ w_h2h + b_h2h + feedback @ w_o2h + noise
        i = (1.0 - alpha_s) * i_prev + alpha_s * pre
        return jax.nn.sigmoid(i), i

    h_r, i_r = h0, i0
    for t in range(seq_len):
        h_r, i_r = ref_step(data_seq[t], h_r, feedback_seq[t], i_r,
                            noise_seq[t])
        assert jnp.allclose(i_seq[t], i_r, atol=1e-4), f"i mismatch at t={t}"
        assert jnp.allclose(h_seq[t], h_r, atol=1e-4), f"h mismatch at t={t}"
        assert jnp.allclose(h_only[t, :, :hidden_size], h_r,
                            atol=1e-4), f"h-only mismatch at t={t}"

    h_r0, i_r0 = ref_step(data_seq[0], h0, feedback_seq[0], i0, noise_seq[0])
    assert jnp.allclose(i1, i_r0, atol=1e-4), "single-step i mismatch"
    assert jnp.allclose(h1, h_r0, atol=1e-4), "single-step h mismatch"

    print("KERNEL_OK")
</pallas_src>

<mosaic_0001>
module attributes {stable_mosaic.version = 11 : i64} {
  func.func @_rnn_seq_kernel(%arg0: i32, %arg1: memref<8x8x128xf32, #tpu.memory_space<vmem>>, %arg2: memref<8x128xf32, #tpu.memory_space<vmem>>, %arg3: memref<8x128xf32, #tpu.memory_space<vmem>>, %arg4: memref<128x128xf32, #tpu.memory_space<vmem>>, %arg5: memref<8x8x128xf32, #tpu.memory_space<vmem>>, %arg6: memref<8x8x128xf32, #tpu.memory_space<vmem>>, %arg7: memref<8x128xf32, #tpu.memory_space<vmem>>, %arg8: memref<8x128xf32, #tpu.memory_space<vmem>>) attributes {dimension_semantics = [#tpu.dimension_semantics<arbitrary>], iteration_bounds = array<i64: 1>, scalar_prefetch = 0 : i64, scratch_operands = 2 : i64, tpu.core_type = #tpu.core_type<tc>, window_params = [{transform_indices = @transform_0, window_bounds = array<i64: 8, 8, 128>}, {pipeline_mode = #tpu.pipeline_mode<synchronous>, transform_indices = @transform_1, window_bounds = array<i64: 8, 128>}, {pipeline_mode = #tpu.pipeline_mode<synchronous>, transform_indices = @transform_2, window_bounds = array<i64: 8, 128>}, {pipeline_mode = #tpu.pipeline_mode<synchronous>, transform_indices = @transform_3, window_bounds = array<i64: 128, 128>}, {transform_indices = @transform_4, window_bounds = array<i64: 8, 8, 128>}, {transform_indices = @transform_5, window_bounds = array<i64: 8, 8, 128>}]} {
    %c0_i32 = arith.constant 0 : i32
    %0 = arith.cmpi eq, %arg0, %c0_i32 : i32
    %1 = arith.extui %0 : i1 to i32
    %c0_i32_0 = arith.constant 0 : i32
    %2 = arith.cmpi ne, %1, %c0_i32_0 : i32
    scf.if %2 {
      %c0_152 = arith.constant 0 : index
      %c0_153 = arith.constant 0 : index
      %211 = vector.load %arg2[%c0_152, %c0_153] : memref<8x128xf32, #tpu.memory_space<vmem>>, vector<8x128xf32>
      %c0_154 = arith.constant 0 : index
      %c0_155 = arith.constant 0 : index
      %212 = vector.load %arg7[%c0_154, %c0_155] : memref<8x128xf32, #tpu.memory_space<vmem>>, vector<8x128xf32>
      tpu.vector_store %arg7[%c0_154, %c0_155], %211 {strides = array<i32>} : memref<8x128xf32, #tpu.memory_space<vmem>>, vector<8x128xf32>,
      %c0_156 = arith.constant 0 : index
      %c0_157 = arith.constant 0 : index
      %213 = vector.load %arg3[%c0_156, %c0_157] : memref<8x128xf32, #tpu.memory_space<vmem>>, vector<8x128xf32>
      %c0_158 = arith.constant 0 : index
      %c0_159 = arith.constant 0 : index
      %214 = vector.load %arg8[%c0_158, %c0_159] : memref<8x128xf32, #tpu.memory_space<vmem>>, vector<8x128xf32>
      tpu.vector_store %arg8[%c0_158, %c0_159], %213 {strides = array<i32>} : memref<8x128xf32, #tpu.memory_space<vmem>>, vector<8x128xf32>,
    } else {
    }
    %c0_i32_1 = arith.constant 0 : i32
    %c0 = arith.constant 0 : index
    %c0_2 = arith.constant 0 : index
    %3 = vector.load %arg7[%c0, %c0_2] : memref<8x128xf32, #tpu.memory_space<vmem>>, vector<8x128xf32>
    %c0_3 = arith.constant 0 : index
    %c0_4 = arith.constant 0 : index
    %4 = vector.load %arg4[%c0_3, %c0_4] : memref<128x128xf32, #tpu.memory_space<vmem>>, vector<128x128xf32>
    %cst = arith.constant dense<0.000000e+00> : vector<8x128xf32>
    %5 = tpu.matmul %3, %4, %cst {dimension_numbers = #tpu.dot_dimension_numbers<[1], [0], [0], [1], [0, 0, 1, 1], [], []>} : vector<8x128xf32>, vector<128x128xf32>, vector<8x128xf32> -> vector<8x128xf32>
    %c0_5 = arith.constant 0 : index
    %c0_6 = arith.constant 0 : index
    %6 = vector.load %arg8[%c0_5, %c0_6] : memref<8x128xf32, #tpu.memory_space<vmem>>, vector<8x128xf32>
    %cst_7 = arith.constant 5.000000e-01 : f32
    %7 = vector.broadcast %cst_7 : f32 to vector<8x128xf32>
    %8 = arith.mulf %7, %6 : vector<8x128xf32>
    %9 = arith.addf %8, %5 : vector<8x128xf32>
    %10 = arith.index_cast %c0_i32_1 : i32 to index
    %c0_8 = arith.constant 0 : index
    %c0_9 = arith.constant 0 : index
    %11 = vector.load %arg1[%10, %c0_8, %c0_9] : memref<8x8x128xf32, #tpu.memory_space<vmem>>, vector<1x8x128xf32>
    %12 = vector.shape_cast %11 : vector<1x8x128xf32> to vector<8x128xf32>
    %13 = arith.addf %9, %12 : vector<8x128xf32>
    %14 = arith.negf %13 : vector<8x128xf32>
    %15 = math.exp %14 : vector<8x128xf32>
    %cst_10 = arith.constant 1.000000e+00 : f32
    %16 = vector.broadcast %cst_10 : f32 to vector<8x128xf32>
    %17 = arith.addf %16, %15 : vector<8x128xf32>
    %18 = arith.divf %16, %17 : vector<8x128xf32>
    %c0_11 = arith.constant 0 : index
    %c0_12 = arith.constant 0 : index
    %19 = vector.load %arg8[%c0_11, %c0_12] : memref<8x128xf32, #tpu.memory_space<vmem>>, vector<8x128xf32>
    tpu.vector_store %arg8[%c0_11, %c0_12], %13 {strides = array<i32>} : memref<8x128xf32, #tpu.memory_space<vmem>>, vector<8x128xf32>,
    %c0_13 = arith.constant 0 : index
    %c0_14 = arith.constant 0 : index
    %20 = vector.load %arg7[%c0_13, %c0_14] : memref<8x128xf32, #tpu.memory_space<vmem>>, vector<8x128xf32>
    tpu.vector_store %arg7[%c0_13, %c0_14], %18 {strides = array<i32>} : memref<8x128xf32, #tpu.memory_space<vmem>>, vector<8x128xf32>,
    %21 = arith.index_cast %c0_i32_1 : i32 to index
    %c0_15 = arith.constant 0 : index
    %c0_16 = arith.constant 0 : index
    %22 = vector.load %arg5[%21, %c0_15, %c0_16] : memref<8x8x128xf32, #tpu.memory_space<vmem>>, vector<1x8x128xf32>
    %23 = vector.shape_cast %22 : vector<1x8x128xf32> to vector<8x128xf32>
    %24 = vector.shape_cast %18 : vector<8x128xf32> to vector<1x8x128xf32>
    tpu.vector_store %arg5[%21, %c0_15, %c0_16], %24 {strides = array<i32>} : memref<8x8x128xf32, #tpu.memory_space<vmem>>, vector<1x8x128xf32>,
    %25 = arith.index_cast %c0_i32_1 : i32 to index
    %c0_17 = arith.constant 0 : index
    %c0_18 = arith.constant 0 : index
    %26 = vector.load %arg6[%25, %c0_17, %c0_18] : memref<8x8x128xf32, #tpu.memory_space<vmem>>, vector<1x8x128xf32>
    %27 = vector.shape_cast %26 : vector<1x8x128xf32> to vector<8x128xf32>
    %28 = vector.shape_cast %13 : vector<8x128xf32> to vector<1x8x128xf32>
    tpu.vector_store %arg6[%25, %c0_17, %c0_18], %28 {strides = array<i32>} : memref<8x8x128xf32, #tpu.memory_space<vmem>>, vector<1x8x128xf32>,
    %c1_i32 = arith.constant 1 : i32
    %c0_19 = arith.constant 0 : index
    %c0_20 = arith.constant 0 : index
    %29 = vector.load %arg7[%c0_19, %c0_20] : memref<8x128xf32, #tpu.memory_space<vmem>>, vector<8x128xf32>
    %c0_21 = arith.constant 0 : index
    %c0_22 = arith.constant 0 : index
    %30 = vector.load %arg4[%c0_21, %c0_22] : memref<128x128xf32, #tpu.memory_space<vmem>>, vector<128x128xf32>
    %cst_23 = arith.constant dense<0.000000e+00> : vector<8x128xf32>
    %31 = tpu.matmul %29, %30, %cst_23 {dimension_numbers = #tpu.dot_dimension_numbers<[1], [0], [0], [1], [0, 0, 1, 1], [], []>} : vector<8x128xf32>, vector<128x128xf32>, vector<8x128xf32> -> vector<8x128xf32>
    %c0_24 = arith.constant 0 : index
    %c0_25 = arith.constant 0 : index
    %32 = vector.load %arg8[%c0_24, %c0_25] : memref<8x128xf32, #tpu.memory_space<vmem>>, vector<8x128xf32>
    %cst_26 = arith.constant 5.000000e-01 : f32
    %33 = vector.broadcast %cst_26 : f32 to vector<8x128xf32>
    %34 = arith.mulf %33, %32 : vector<8x128xf32>
    %35 = arith.addf %34, %31 : vector<8x128xf32>
    %36 = arith.index_cast %c1_i32 : i32 to index
    %c0_27 = arith.constant 0 : index
    %c0_28 = arith.constant 0 : index
    %37 = vector.load %arg1[%36, %c0_27, %c0_28] : memref<8x8x128xf32, #tpu.memory_space<vmem>>, vector<1x8x128xf32>
    %38 = vector.shape_cast %37 : vector<1x8x128xf32> to vector<8x128xf32>
    %39 = arith.addf %35, %38 : vector<8x128xf32>
    %40 = arith.negf %39 : vector<8x128xf32>
    %41 = math.exp %40 : vector<8x128xf32>
    %cst_29 = arith.constant 1.000000e+00 : f32
    %42 = vector.broadcast %cst_29 : f32 to vector<8x128xf32>
    %43 = arith.addf %42, %41 : vector<8x128xf32>
    %44 = arith.divf %42, %43 : vector<8x128xf32>
    %c0_30 = arith.constant 0 : index
    %c0_31 = arith.constant 0 : index
    %45 = vector.load %arg8[%c0_30, %c0_31] : memref<8x128xf32, #tpu.memory_space<vmem>>, vector<8x128xf32>
    tpu.vector_store %arg8[%c0_30, %c0_31], %39 {strides = array<i32>} : memref<8x128xf32, #tpu.memory_space<vmem>>, vector<8x128xf32>,
    %c0_32 = arith.constant 0 : index
    %c0_33 = arith.constant 0 : index
    %46 = vector.load %arg7[%c0_32, %c0_33] : memref<8x128xf32, #tpu.memory_space<vmem>>, vector<8x128xf32>
    tpu.vector_store %arg7[%c0_32, %c0_33], %44 {strides = array<i32>} : memref<8x128xf32, #tpu.memory_space<vmem>>, vector<8x128xf32>,
    %47 = arith.index_cast %c1_i32 : i32 to index
    %c0_34 = arith.constant 0 : index
    %c0_35 = arith.constant 0 : index
    %48 = vector.load %arg5[%47, %c0_34, %c0_35] : memref<8x8x128xf32, #tpu.memory_space<vmem>>, vector<1x8x128xf32>
    %49 = vector.shape_cast %48 : vector<1x8x128xf32> to vector<8x128xf32>
    %50 = vector.shape_cast %44 : vector<8x128xf32> to vector<1x8x128xf32>
    tpu.vector_store %arg5[%47, %c0_34, %c0_35], %50 {strides = array<i32>} : memref<8x8x128xf32, #tpu.memory_space<vmem>>, vector<1x8x128xf32>,
    %51 = arith.index_cast %c1_i32 : i32 to index
    %c0_36 = arith.constant 0 : index
    %c0_37 = arith.constant 0 : index
    %52 = vector.load %arg6[%51, %c0_36, %c0_37] : memref<8x8x128xf32, #tpu.memory_space<vmem>>, vector<1x8x128xf32>
    %53 = vector.shape_cast %52 : vector<1x8x128xf32> to vector<8x128xf32>
    %54 = vector.shape_cast %39 : vector<8x128xf32> to vector<1x8x128xf32>
    tpu.vector_store %arg6[%51, %c0_36, %c0_37], %54 {strides = array<i32>} : memref<8x8x128xf32, #tpu.memory_space<vmem>>, vector<1x8x128xf32>,
    %c2_i32 = arith.constant 2 : i32
    %c0_38 = arith.constant 0 : index
    %c0_39 = arith.constant 0 : index
    %55 = vector.load %arg7[%c0_38, %c0_39] : memref<8x128xf32, #tpu.memory_space<vmem>>, vector<8x128xf32>
    %c0_40 = arith.constant 0 : index
    %c0_41 = arith.constant 0 : index
    %56 = vector.load %arg4[%c0_40, %c0_41] : memref<128x128xf32, #tpu.memory_space<vmem>>, vector<128x128xf32>
    %cst_42 = arith.constant dense<0.000000e+00> : vector<8x128xf32>
    %57 = tpu.matmul %55, %56, %cst_42 {dimension_numbers = #tpu.dot_dimension_numbers<[1], [0], [0], [1], [0, 0, 1, 1], [], []>} : vector<8x128xf32>, vector<128x128xf32>, vector<8x128xf32> -> vector<8x128xf32>
    %c0_43 = arith.constant 0 : index
    %c0_44 = arith.constant 0 : index
    %58 = vector.load %arg8[%c0_43, %c0_44] : memref<8x128xf32, #tpu.memory_space<vmem>>, vector<8x128xf32>
    %cst_45 = arith.constant 5.000000e-01 : f32
    %59 = vector.broadcast %cst_45 : f32 to vector<8x128xf32>
    %60 = arith.mulf %59, %58 : vector<8x128xf32>
    %61 = arith.addf %60, %57 : vector<8x128xf32>
    %62 = arith.index_cast %c2_i32 : i32 to index
    %c0_46 = arith.constant 0 : index
    %c0_47 = arith.constant 0 : index
    %63 = vector.load %arg1[%62, %c0_46, %c0_47] : memref<8x8x128xf32, #tpu.memory_space<vmem>>, vector<1x8x128xf32>
    %64 = vector.shape_cast %63 : vector<1x8x128xf32> to vector<8x128xf32>
    %65 = arith.addf %61, %64 : vector<8x128xf32>
    %66 = arith.negf %65 : vector<8x128xf32>
    %67 = math.exp %66 : vector<8x128xf32>
    %cst_48 = arith.constant 1.000000e+00 : f32
    %68 = vector.broadcast %cst_48 : f32 to vector<8x128xf32>
    %69 = arith.addf %68, %67 : vector<8x128xf32>
    %70 = arith.divf %68, %69 : vector<8x128xf32>
    %c0_49 = arith.constant 0 : index
    %c0_50 = arith.constant 0 : index
    %71 = vector.load %arg8[%c0_49, %c0_50] : memref<8x128xf32, #tpu.memory_space<vmem>>, vector<8x128xf32>
    tpu.vector_store %arg8[%c0_49, %c0_50], %65 {strides = array<i32>} : memref<8x128xf32, #tpu.memory_space<vmem>>, vector<8x128xf32>,
    %c0_51 = arith.constant 0 : index
    %c0_52 = arith.constant 0 : index
    %72 = vector.load %arg7[%c0_51, %c0_52] : memref<8x128xf32, #tpu.memory_space<vmem>>, vector<8x128xf32>
    tpu.vector_store %arg7[%c0_51, %c0_52], %70 {strides = array<i32>} : memref<8x128xf32, #tpu.memory_space<vmem>>, vector<8x128xf32>,
    %73 = arith.index_cast %c2_i32 : i32 to index
    %c0_53 = arith.constant 0 : index
    %c0_54 = arith.constant 0 : index
    %74 = vector.load %arg5[%73, %c0_53, %c0_54] : memref<8x8x128xf32, #tpu.memory_space<vmem>>, vector<1x8x128xf32>
    %75 = vector.shape_cast %74 : vector<1x8x128xf32> to vector<8x128xf32>
    %76 = vector.shape_cast %70 : vector<8x128xf32> to vector<1x8x128xf32>
    tpu.vector_store %arg5[%73, %c0_53, %c0_54], %76 {strides = array<i32>} : memref<8x8x128xf32, #tpu.memory_space<vmem>>, vector<1x8x128xf32>,
    %77 = arith.index_cast %c2_i32 : i32 to index
    %c0_55 = arith.constant 0 : index
    %c0_56 = arith.constant 0 : index
    %78 = vector.load %arg6[%77, %c0_55, %c0_56] : memref<8x8x128xf32, #tpu.memory_space<vmem>>, vector<1x8x128xf32>
    %79 = vector.shape_cast %78 : vector<1x8x128xf32> to vector<8x128xf32>
    %80 = vector.shape_cast %65 : vector<8x128xf32> to vector<1x8x128xf32>
    tpu.vector_store %arg6[%77, %c0_55, %c0_56], %80 {strides = array<i32>} : memref<8x8x128xf32, #tpu.memory_space<vmem>>, vector<1x8x128xf32>,
    %c3_i32 = arith.constant 3 : i32
    %c0_57 = arith.constant 0 : index
    %c0_58 = arith.constant 0 : index
    %81 = vector.load %arg7[%c0_57, %c0_58] : memref<8x128xf32, #tpu.memory_space<vmem>>, vector<8x128xf32>
    %c0_59 = arith.constant 0 : index
    %c0_60 = arith.constant 0 : index
    %82 = vector.load %arg4[%c0_59, %c0_60] : memref<128x128xf32, #tpu.memory_space<vmem>>, vector<128x128xf32>
    %cst_61 = arith.constant dense<0.000000e+00> : vector<8x128xf32>
    %83 = tpu.matmul %81, %82, %cst_61 {dimension_numbers = #tpu.dot_dimension_numbers<[1], [0], [0], [1], [0, 0, 1, 1], [], []>} : vector<8x128xf32>, vector<128x128xf32>, vector<8x128xf32> -> vector<8x128xf32>
    %c0_62 = arith.constant 0 : index
    %c0_63 = arith.constant 0 : index
    %84 = vector.load %arg8[%c0_62, %c0_63] : memref<8x128xf32, #tpu.memory_space<vmem>>, vector<8x128xf32>
    %cst_64 = arith.constant 5.000000e-01 : f32
    %85 = vector.broadcast %cst_64 : f32 to vector<8x128xf32>
    %86 = arith.mulf %85, %84 : vector<8x128xf32>
    %87 = arith.addf %86, %83 : vector<8x128xf32>
    %88 = arith.index_cast %c3_i32 : i32 to index
    %c0_65 = arith.constant 0 : index
    %c0_66 = arith.constant 0 : index
    %89 = vector.load %arg1[%88, %c0_65, %c0_66] : memref<8x8x128xf32, #tpu.memory_space<vmem>>, vector<1x8x128xf32>
    %90 = vector.shape_cast %89 : vector<1x8x128xf32> to vector<8x128xf32>
    %91 = arith.addf %87, %90 : vector<8x128xf32>
    %92 = arith.negf %91 : vector<8x128xf32>
    %93 = math.exp %92 : vector<8x128xf32>
    %cst_67 = arith.constant 1.000000e+00 : f32
    %94 = vector.broadcast %cst_67 : f32 to vector<8x128xf32>
    %95 = arith.addf %94, %93 : vector<8x128xf32>
    %96 = arith.divf %94, %95 : vector<8x128xf32>
    %c0_68 = arith.constant 0 : index
    %c0_69 = arith.constant 0 : index
    %97 = vector.load %arg8[%c0_68, %c0_69] : memref<8x128xf32, #tpu.memory_space<vmem>>, vector<8x128xf32>
    tpu.vector_store %arg8[%c0_68, %c0_69], %91 {strides = array<i32>} : memref<8x128xf32, #tpu.memory_space<vmem>>, vector<8x128xf32>,
    %c0_70 = arith.constant 0 : index
    %c0_71 = arith.constant 0 : index
    %98 = vector.load %arg7[%c0_70, %c0_71] : memref<8x128xf32, #tpu.memory_space<vmem>>, vector<8x128xf32>
    tpu.vector_store %arg7[%c0_70, %c0_71], %96 {strides = array<i32>} : memref<8x128xf32, #tpu.memory_space<vmem>>, vector<8x128xf32>,
    %99 = arith.index_cast %c3_i32 : i32 to index
    %c0_72 = arith.constant 0 : index
    %c0_73 = arith.constant 0 : index
    %100 = vector.load %arg5[%99, %c0_72, %c0_73] : memref<8x8x128xf32, #tpu.memory_space<vmem>>, vector<1x8x128xf32>
    %101 = vector.shape_cast %100 : vector<1x8x128xf32> to vector<8x128xf32>
    %102 = vector.shape_cast %96 : vector<8x128xf32> to vector<1x8x128xf32>
    tpu.vector_store %arg5[%99, %c0_72, %c0_73], %102 {strides = array<i32>} : memref<8x8x128xf32, #tpu.memory_space<vmem>>, vector<1x8x128xf32>,
    %103 = arith.index_cast %c3_i32 : i32 to index
    %c0_74 = arith.constant 0 : index
    %c0_75 = arith.constant 0 : index
    %104 = vector.load %arg6[%103, %c0_74, %c0_75] : memref<8x8x128xf32, #tpu.memory_space<vmem>>, vector<1x8x128xf32>
    %105 = vector.shape_cast %104 : vector<1x8x128xf32> to vector<8x128xf32>
    %106 = vector.shape_cast %91 : vector<8x128xf32> to vector<1x8x128xf32>
    tpu.vector_store %arg6[%103, %c0_74, %c0_75], %106 {strides = array<i32>} : memref<8x8x128xf32, #tpu.memory_space<vmem>>, vector<1x8x128xf32>,
    %c4_i32 = arith.constant 4 : i32
    %c0_76 = arith.constant 0 : index
    %c0_77 = arith.constant 0 : index
    %107 = vector.load %arg7[%c0_76, %c0_77] : memref<8x128xf32, #tpu.memory_space<vmem>>, vector<8x128xf32>
    %c0_78 = arith.constant 0 : index
    %c0_79 = arith.constant 0 : index
    %108 = vector.load %arg4[%c0_78, %c0_79] : memref<128x128xf32, #tpu.memory_space<vmem>>, vector<128x128xf32>
    %cst_80 = arith.constant dense<0.000000e+00> : vector<8x128xf32>
    %109 = tpu.matmul %107, %108, %cst_80 {dimension_numbers = #tpu.dot_dimension_numbers<[1], [0], [0], [1], [0, 0, 1, 1], [], []>} : vector<8x128xf32>, vector<128x128xf32>, vector<8x128xf32> -> vector<8x128xf32>
    %c0_81 = arith.constant 0 : index
    %c0_82 = arith.constant 0 : index
    %110 = vector.load %arg8[%c0_81, %c0_82] : memref<8x128xf32, #tpu.memory_space<vmem>>, vector<8x128xf32>
    %cst_83 = arith.constant 5.000000e-01 : f32
    %111 = vector.broadcast %cst_83 : f32 to vector<8x128xf32>
    %112 = arith.mulf %111, %110 : vector<8x128xf32>
    %113 = arith.addf %112, %109 : vector<8x128xf32>
    %114 = arith.index_cast %c4_i32 : i32 to index
    %c0_84 = arith.constant 0 : index
    %c0_85 = arith.constant 0 : index
    %115 = vector.load %arg1[%114, %c0_84, %c0_85] : memref<8x8x128xf32, #tpu.memory_space<vmem>>, vector<1x8x128xf32>
    %116 = vector.shape_cast %115 : vector<1x8x128xf32> to vector<8x128xf32>
    %117 = arith.addf %113, %116 : vector<8x128xf32>
    %118 = arith.negf %117 : vector<8x128xf32>
    %119 = math.exp %118 : vector<8x128xf32>
    %cst_86 = arith.constant 1.000000e+00 : f32
    %120 = vector.broadcast %cst_86 : f32 to vector<8x128xf32>
    %121 = arith.addf %120, %119 : vector<8x128xf32>
    %122 = arith.divf %120, %121 : vector<8x128xf32>
    %c0_87 = arith.constant 0 : index
    %c0_88 = arith.constant 0 : index
    %123 = vector.load %arg8[%c0_87, %c0_88] : memref<8x128xf32, #tpu.memory_space<vmem>>, vector<8x128xf32>
    tpu.vector_store %arg8[%c0_87, %c0_88], %117 {strides = array<i32>} : memref<8x128xf32, #tpu.memory_space<vmem>>, vector<8x128xf32>,
    %c0_89 = arith.constant 0 : index
    %c0_90 = arith.constant 0 : index
    %124 = vector.load %arg7[%c0_89, %c0_90] : memref<8x128xf32, #tpu.memory_space<vmem>>, vector<8x128xf32>
    tpu.vector_store %arg7[%c0_89, %c0_90], %122 {strides = array<i32>} : memref<8x128xf32, #tpu.memory_space<vmem>>, vector<8x128xf32>,
    %125 = arith.index_cast %c4_i32 : i32 to index
    %c0_91 = arith.constant 0 : index
    %c0_92 = arith.constant 0 : index
    %126 = vector.load %arg5[%125, %c0_91, %c0_92] : memref<8x8x128xf32, #tpu.memory_space<vmem>>, vector<1x8x128xf32>
    %127 = vector.shape_cast %126 : vector<1x8x128xf32> to vector<8x128xf32>
    %128 = vector.shape_cast %122 : vector<8x128xf32> to vector<1x8x128xf32>
    tpu.vector_store %arg5[%125, %c0_91, %c0_92], %128 {strides = array<i32>} : memref<8x8x128xf32, #tpu.memory_space<vmem>>, vector<1x8x128xf32>,
    %129 = arith.index_cast %c4_i32 : i32 to index
    %c0_93 = arith.constant 0 : index
    %c0_94 = arith.constant 0 : index
    %130 = vector.load %arg6[%129, %c0_93, %c0_94] : memref<8x8x128xf32, #tpu.memory_space<vmem>>, vector<1x8x128xf32>
    %131 = vector.shape_cast %130 : vector<1x8x128xf32> to vector<8x128xf32>
    %132 = vector.shape_cast %117 : vector<8x128xf32> to vector<1x8x128xf32>
    tpu.vector_store %arg6[%129, %c0_93, %c0_94], %132 {strides = array<i32>} : memref<8x8x128xf32, #tpu.memory_space<vmem>>, vector<1x8x128xf32>,
    %c5_i32 = arith.constant 5 : i32
    %c0_95 = arith.constant 0 : index
    %c0_96 = arith.constant 0 : index
    %133 = vector.load %arg7[%c0_95, %c0_96] : memref<8x128xf32, #tpu.memory_space<vmem>>, vector<8x128xf32>
    %c0_97 = arith.constant 0 : index
    %c0_98 = arith.constant 0 : index
    %134 = vector.load %arg4[%c0_97, %c0_98] : memref<128x128xf32, #tpu.memory_space<vmem>>, vector<128x128xf32>
    %cst_99 = arith.constant dense<0.000000e+00> : vector<8x128xf32>
    %135 = tpu.matmul %133, %134, %cst_99 {dimension_numbers = #tpu.dot_dimension_numbers<[1], [0], [0], [1], [0, 0, 1, 1], [], []>} : vector<8x128xf32>, vector<128x128xf32>, vector<8x128xf32> -> vector<8x128xf32>
    %c0_100 = arith.constant 0 : index
    %c0_101 = arith.constant 0 : index
    %136 = vector.load %arg8[%c0_100, %c0_101] : memref<8x128xf32, #tpu.memory_space<vmem>>, vector<8x128xf32>
    %cst_102 = arith.constant 5.000000e-01 : f32
    %137 = vector.broadcast %cst_102 : f32 to vector<8x128xf32>
    %138 = arith.mulf %137, %136 : vector<8x128xf32>
    %139 = arith.addf %138, %135 : vector<8x128xf32>
    %140 = arith.index_cast %c5_i32 : i32 to index
    %c0_103 = arith.constant 0 : index
    %c0_104 = arith.constant 0 : index
    %141 = vector.load %arg1[%140, %c0_103, %c0_104] : memref<8x8x128xf32, #tpu.memory_space<vmem>>, vector<1x8x128xf32>
    %142 = vector.shape_cast %141 : vector<1x8x128xf32> to vector<8x128xf32>
    %143 = arith.addf %139, %142 : vector<8x128xf32>
    %144 = arith.negf %143 : vector<8x128xf32>
    %145 = math.exp %144 : vector<8x128xf32>
    %cst_105 = arith.constant 1.000000e+00 : f32
    %146 = vector.broadcast %cst_105 : f32 to vector<8x128xf32>
    %147 = arith.addf %146, %145 : vector<8x128xf32>
    %148 = arith.divf %146, %147 : vector<8x128xf32>
    %c0_106 = arith.constant 0 : index
    %c0_107 = arith.constant 0 : index
    %149 = vector.load %arg8[%c0_106, %c0_107] : memref<8x128xf32, #tpu.memory_space<vmem>>, vector<8x128xf32>
    tpu.vector_store %arg8[%c0_106, %c0_107], %143 {strides = array<i32>} : memref<8x128xf32, #tpu.memory_space<vmem>>, vector<8x128xf32>,
    %c0_108 = arith.constant 0 : index
    %c0_109 = arith.constant 0 : index
    %150 = vector.load %arg7[%c0_108, %c0_109] : memref<8x128xf32, #tpu.memory_space<vmem>>, vector<8x128xf32>
    tpu.vector_store %arg7[%c0_108, %c0_109], %148 {strides = array<i32>} : memref<8x128xf32, #tpu.memory_space<vmem>>, vector<8x128xf32>,
    %151 = arith.index_cast %c5_i32 : i32 to index
    %c0_110 = arith.constant 0 : index
    %c0_111 = arith.constant 0 : index
    %152 = vector.load %arg5[%151, %c0_110, %c0_111] : memref<8x8x128xf32, #tpu.memory_space<vmem>>, vector<1x8x128xf32>
    %153 = vector.shape_cast %152 : vector<1x8x128xf32> to vector<8x128xf32>
    %154 = vector.shape_cast %148 : vector<8x128xf32> to vector<1x8x128xf32>
    tpu.vector_store %arg5[%151, %c0_110, %c0_111], %154 {strides = array<i32>} : memref<8x8x128xf32, #tpu.memory_space<vmem>>, vector<1x8x128xf32>,
    %155 = arith.index_cast %c5_i32 : i32 to index
    %c0_112 = arith.constant 0 : index
    %c0_113 = arith.constant 0 : index
    %156 = vector.load %arg6[%155, %c0_112, %c0_113] : memref<8x8x128xf32, #tpu.memory_space<vmem>>, vector<1x8x128xf32>
    %157 = vector.shape_cast %156 : vector<1x8x128xf32> to vector<8x128xf32>
    %158 = vector.shape_cast %143 : vector<8x128xf32> to vector<1x8x128xf32>
    tpu.vector_store %arg6[%155, %c0_112, %c0_113], %158 {strides = array<i32>} : memref<8x8x128xf32, #tpu.memory_space<vmem>>, vector<1x8x128xf32>,
    %c6_i32 = arith.constant 6 : i32
    %c0_114 = arith.constant 0 : index
    %c0_115 = arith.constant 0 : index
    %159 = vector.load %arg7[%c0_114, %c0_115] : memref<8x128xf32, #tpu.memory_space<vmem>>, vector<8x128xf32>
    %c0_116 = arith.constant 0 : index
    %c0_117 = arith.constant 0 : index
    %160 = vector.load %arg4[%c0_116, %c0_117] : memref<128x128xf32, #tpu.memory_space<vmem>>, vector<128x128xf32>
    %cst_118 = arith.constant dense<0.000000e+00> : vector<8x128xf32>
    %161 = tpu.matmul %159, %160, %cst_118 {dimension_numbers = #tpu.dot_dimension_numbers<[1], [0], [0], [1], [0, 0, 1, 1], [], []>} : vector<8x128xf32>, vector<128x128xf32>, vector<8x128xf32> -> vector<8x128xf32>
    %c0_119 = arith.constant 0 : index
    %c0_120 = arith.constant 0 : index
    %162 = vector.load %arg8[%c0_119, %c0_120] : memref<8x128xf32, #tpu.memory_space<vmem>>, vector<8x128xf32>
    %cst_121 = arith.constant 5.000000e-01 : f32
    %163 = vector.broadcast %cst_121 : f32 to vector<8x128xf32>
    %164 = arith.mulf %163, %162 : vector<8x128xf32>
    %165 = arith.addf %164, %161 : vector<8x128xf32>
    %166 = arith.index_cast %c6_i32 : i32 to index
    %c0_122 = arith.constant 0 : index
    %c0_123 = arith.constant 0 : index
    %167 = vector.load %arg1[%166, %c0_122, %c0_123] : memref<8x8x128xf32, #tpu.memory_space<vmem>>, vector<1x8x128xf32>
    %168 = vector.shape_cast %167 : vector<1x8x128xf32> to vector<8x128xf32>
    %169 = arith.addf %165, %168 : vector<8x128xf32>
    %170 = arith.negf %169 : vector<8x128xf32>
    %171 = math.exp %170 : vector<8x128xf32>
    %cst_124 = arith.constant 1.000000e+00 : f32
    %172 = vector.broadcast %cst_124 : f32 to vector<8x128xf32>
    %173 = arith.addf %172, %171 : vector<8x128xf32>
    %174 = arith.divf %172, %173 : vector<8x128xf32>
    %c0_125 = arith.constant 0 : index
    %c0_126 = arith.constant 0 : index
    %175 = vector.load %arg8[%c0_125, %c0_126] : memref<8x128xf32, #tpu.memory_space<vmem>>, vector<8x128xf32>
    tpu.vector_store %arg8[%c0_125, %c0_126], %169 {strides = array<i32>} : memref<8x128xf32, #tpu.memory_space<vmem>>, vector<8x128xf32>,
    %c0_127 = arith.constant 0 : index
    %c0_128 = arith.constant 0 : index
    %176 = vector.load %arg7[%c0_127, %c0_128] : memref<8x128xf32, #tpu.memory_space<vmem>>, vector<8x128xf32>
    tpu.vector_store %arg7[%c0_127, %c0_128], %174 {strides = array<i32>} : memref<8x128xf32, #tpu.memory_space<vmem>>, vector<8x128xf32>,
    %177 = arith.index_cast %c6_i32 : i32 to index
    %c0_129 = arith.constant 0 : index
    %c0_130 = arith.constant 0 : index
    %178 = vector.load %arg5[%177, %c0_129, %c0_130] : memref<8x8x128xf32, #tpu.memory_space<vmem>>, vector<1x8x128xf32>
    %179 = vector.shape_cast %178 : vector<1x8x128xf32> to vector<8x128xf32>
    %180 = vector.shape_cast %174 : vector<8x128xf32> to vector<1x8x128xf32>
    tpu.vector_store %arg5[%177, %c0_129, %c0_130], %180 {strides = array<i32>} : memref<8x8x128xf32, #tpu.memory_space<vmem>>, vector<1x8x128xf32>,
    %181 = arith.index_cast %c6_i32 : i32 to index
    %c0_131 = arith.constant 0 : index
    %c0_132 = arith.constant 0 : index
    %182 = vector.load %arg6[%181, %c0_131, %c0_132] : memref<8x8x128xf32, #tpu.memory_space<vmem>>, vector<1x8x128xf32>
    %183 = vector.shape_cast %182 : vector<1x8x128xf32> to vector<8x128xf32>
    %184 = vector.shape_cast %169 : vector<8x128xf32> to vector<1x8x128xf32>
    tpu.vector_store %arg6[%181, %c0_131, %c0_132], %184 {strides = array<i32>} : memref<8x8x128xf32, #tpu.memory_space<vmem>>, vector<1x8x128xf32>,
    %c7_i32 = arith.constant 7 : i32
    %c0_133 = arith.constant 0 : index
    %c0_134 = arith.constant 0 : index
    %185 = vector.load %arg7[%c0_133, %c0_134] : memref<8x128xf32, #tpu.memory_space<vmem>>, vector<8x128xf32>
    %c0_135 = arith.constant 0 : index
    %c0_136 = arith.constant 0 : index
    %186 = vector.load %arg4[%c0_135, %c0_136] : memref<128x128xf32, #tpu.memory_space<vmem>>, vector<128x128xf32>
    %cst_137 = arith.constant dense<0.000000e+00> : vector<8x128xf32>
    %187 = tpu.matmul %185, %186, %cst_137 {dimension_numbers = #tpu.dot_dimension_numbers<[1], [0], [0], [1], [0, 0, 1, 1], [], []>} : vector<8x128xf32>, vector<128x128xf32>, vector<8x128xf32> -> vector<8x128xf32>
    %c0_138 = arith.constant 0 : index
    %c0_139 = arith.constant 0 : index
    %188 = vector.load %arg8[%c0_138, %c0_139] : memref<8x128xf32, #tpu.memory_space<vmem>>, vector<8x128xf32>
    %cst_140 = arith.constant 5.000000e-01 : f32
    %189 = vector.broadcast %cst_140 : f32 to vector<8x128xf32>
    %190 = arith.mulf %189, %188 : vector<8x128xf32>
    %191 = arith.addf %190, %187 : vector<8x128xf32>
    %192 = arith.index_cast %c7_i32 : i32 to index
    %c0_141 = arith.constant 0 : index
    %c0_142 = arith.constant 0 : index
    %193 = vector.load %arg1[%192, %c0_141, %c0_142] : memref<8x8x128xf32, #tpu.memory_space<vmem>>, vector<1x8x128xf32>
    %194 = vector.shape_cast %193 : vector<1x8x128xf32> to vector<8x128xf32>
    %195 = arith.addf %191, %194 : vector<8x128xf32>
    %196 = arith.negf %195 : vector<8x128xf32>
    %197 = math.exp %196 : vector<8x128xf32>
    %cst_143 = arith.constant 1.000000e+00 : f32
    %198 = vector.broadcast %cst_143 : f32 to vector<8x128xf32>
    %199 = arith.addf %198, %197 : vector<8x128xf32>
    %200 = arith.divf %198, %199 : vector<8x128xf32>
    %c0_144 = arith.constant 0 : index
    %c0_145 = arith.constant 0 : index
    %201 = vector.load %arg8[%c0_144, %c0_145] : memref<8x128xf32, #tpu.memory_space<vmem>>, vector<8x128xf32>
    tpu.vector_store %arg8[%c0_144, %c0_145], %195 {strides = array<i32>} : memref<8x128xf32, #tpu.memory_space<vmem>>, vector<8x128xf32>,
    %c0_146 = arith.constant 0 : index
    %c0_147 = arith.constant 0 : index
    %202 = vector.load %arg7[%c0_146, %c0_147] : memref<8x128xf32, #tpu.memory_space<vmem>>, vector<8x128xf32>
    tpu.vector_store %arg7[%c0_146, %c0_147], %200 {strides = array<i32>} : memref<8x128xf32, #tpu.memory_space<vmem>>, vector<8x128xf32>,
    %203 = arith.index_cast %c7_i32 : i32 to index
    %c0_148 = arith.constant 0 : index
    %c0_149 = arith.constant 0 : index
    %204 = vector.load %arg5[%203, %c0_148, %c0_149] : memref<8x8x128xf32, #tpu.memory_space<vmem>>, vector<1x8x128xf32>
    %205 = vector.shape_cast %204 : vector<1x8x128xf32> to vector<8x128xf32>
    %206 = vector.shape_cast %200 : vector<8x128xf32> to vector<1x8x128xf32>
    tpu.vector_store %arg5[%203, %c0_148, %c0_149], %206 {strides = array<i32>} : memref<8x8x128xf32, #tpu.memory_space<vmem>>, vector<1x8x128xf32>,
    %207 = arith.index_cast %c7_i32 : i32 to index
    %c0_150 = arith.constant 0 : index
    %c0_151 = arith.constant 0 : index
    %208 = vector.load %arg6[%207, %c0_150, %c0_151] : memref<8x8x128xf32, #tpu.memory_space<vmem>>, vector<1x8x128xf32>
    %209 = vector.shape_cast %208 : vector<1x8x128xf32> to vector<8x128xf32>
    %210 = vector.shape_cast %195 : vector<8x128xf32> to vector<1x8x128xf32>
    tpu.vector_store %arg6[%207, %c0_150, %c0_151], %210 {strides = array<i32>} : memref<8x8x128xf32, #tpu.memory_space<vmem>>, vector<1x8x128xf32>,
    %c8_i32 = arith.constant 8 : i32
    return
  }
  func.func @transform_0(%arg0: i32) -> (i32, i32, i32) {
    %c0_i32 = arith.constant 0 : i32
    %c0_i32_0 = arith.constant 0 : i32
    %c0_i32_1 = arith.constant 0 : i32
    return %arg0, %c0_i32, %c0_i32_0 : i32, i32, i32
  }
  func.func @transform_1(%arg0: i32) -> (i32, i32) {
    %c0_i32 = arith.constant 0 : i32
    %c0_i32_0 = arith.constant 0 : i32
    %c0_i32_1 = arith.constant 0 : i32
    return %c0_i32, %c0_i32_0 : i32, i32
  }
  func.func @transform_2(%arg0: i32) -> (i32, i32) {
    %c0_i32 = arith.constant 0 : i32
    %c0_i32_0 = arith.constant 0 : i32
    %c0_i32_1 = arith.constant 0 : i32
    return %c0_i32, %c0_i32_0 : i32, i32
  }
  func.func @transform_3(%arg0: i32) -> (i32, i32) {
    %c0_i32 = arith.constant 0 : i32
    %c0_i32_0 = arith.constant 0 : i32
    %c0_i32_1 = arith.constant 0 : i32
    return %c0_i32, %c0_i32_0 : i32, i32
  }
  func.func @transform_4(%arg0: i32) -> (i32, i32, i32) {
    %c0_i32 = arith.constant 0 : i32
    %c0_i32_0 = arith.constant 0 : i32
    %c0_i32_1 = arith.constant 0 : i32
    return %arg0, %c0_i32, %c0_i32_0 : i32, i32, i32
  }
  func.func @transform_5(%arg0: i32) -> (i32, i32, i32) {
    %c0_i32 = arith.constant 0 : i32
    %c0_i32_0 = arith.constant 0 : i32
    %c0_i32_1 = arith.constant 0 : i32
    return %arg0, %c0_i32, %c0_i32_0 : i32, i32, i32
  }
}

</mosaic_0001>

<bundles_post_ra>
// kernel: rnn_cell_sequence.1
= control target key start
LH: loop header
LB: loop body
LE: loop exit
PB: predicated region body
PF: predicated region fallthrough
CT: control target
= control target key end

     0   :  { %11 = vsyncpa [#allocation5], 0  ;;  %s993_s0 = inlined_call_operand.vmem [shape: f32[8,8,128], index: 0, kind: input, shape index: {}]   ;;  %s994_s1 = inlined_call_operand.vmem [shape: f32[8,128], index: 1, kind: input, shape index: {}]   ;;  %s995_s2 = inlined_call_operand.vmem [shape: f32[8,128], index: 2, kind: input, shape index: {}]   ;;  %s996_s3 = inlined_call_operand.vmem [shape: f32[128,128], index: 3, kind: input, shape index: {}]   ;;  %s997_s4 = inlined_call_operand.hbm [shape: f32[8,8,128], index: 4, kind: output, shape index: {0}]   ;;  %s998_s5 = inlined_call_operand.hbm [shape: f32[8,8,128], index: 5, kind: output, shape index: {1}]  }
   0x1   :  { %v746_v0 = vld [vmem:[%s996_s3 + $0x78] sm:$0xff]  ;;  %v751_v1 = vld [vmem:[%s996_s3 + $0x70] sm:$0xff]  ;;  %v758_v2 = vld [vmem:[%s996_s3 + $0x68] sm:$0xff] }
   0x2   :  { %46 = vmatpush.msra.mxu0 %v746_v0  ;;  %111 = vmatpush.msra.mxu1 %v746_v0  ;;  %v767_v3 = vld [vmem:[%s996_s3 + $0x60] sm:$0xff]  ;;  %v776_v4 = vld [vmem:[%s996_s3 + $0x58] sm:$0xff] }
   0x3   :  { %179 = vmatpush.msra.mxu2 %v746_v0  ;;  %247 = vmatpush.msra.mxu3 %v746_v0 }
   0x4   :  { %47 = vmatpush.msra.mxu0 %v751_v1  ;;  %112 = vmatpush.msra.mxu1 %v751_v1 }
   0x5   :  { %180 = vmatpush.msra.mxu2 %v751_v1  ;;  %248 = vmatpush.msra.mxu3 %v751_v1 }
   0x6   :  { %48 = vmatpush.msra.mxu0 %v758_v2  ;;  %113 = vmatpush.msra.mxu1 %v758_v2 }
   0x7   :  { %181 = vmatpush.msra.mxu2 %v758_v2  ;;  %249 = vmatpush.msra.mxu3 %v758_v2 }
   0x8   :  { %12 = vsyncpa [#allocation7], 0  ;;  %49 = vmatpush.msra.mxu0 %v767_v3  ;;  %114 = vmatpush.msra.mxu1 %v767_v3  ;;  %v785_v5 = vld [vmem:[%s996_s3 + $0x50] sm:$0xff]  ;;  %v794_v6 = vld [vmem:[%s996_s3 + $0x48] sm:$0xff]  ;;  %s709_s17 = smov [#allocation6]   ;;  %s589_s21 = sshll.u32 %s998_s5, 4  ;;  %s590_s21 = int_to_ptr.hbm [resolvable:$true] %s589_s21 }
   0x9   :  { %182 = vmatpush.msra.mxu2 %v767_v3  ;;  %250 = vmatpush.msra.mxu3 %v767_v3  ;;  %v803_v7 = vld [vmem:[%s996_s3 + $0x40] sm:$0xff]  ;;  %v812_v8 = vld [vmem:[%s996_s3 + $0x38] sm:$0xff]  ;;  %v821_v9 = vld [vmem:[%s996_s3 + $0x30] sm:$0xff]  ;;  %s587_s18 = sshll.u32 %s709_s17, 4  ;;  %s710_s22 = smov 128   ;;  %s588_s18 = int_to_ptr.vmem [resolvable:$true] %s587_s18 }
   0xa   :  { %50 = vmatpush.msra.mxu0 %v776_v4  ;;  %115 = vmatpush.msra.mxu1 %v776_v4  ;;  %v830_v10 = vld [vmem:[%s996_s3 + $0x28] sm:$0xff]  ;;  %v839_v11 = vld [vmem:[%s996_s3 + $0x20] sm:$0xff]  ;;  %v848_v12 = vld [vmem:[%s996_s3 + $0x18] sm:$0xff]  ;;  %s711_s23 = smov 8   ;;  %s576_s26 = sshll.u32 %s997_s4, 4  ;;  %s577_s26 = int_to_ptr.hbm [resolvable:$true] %s576_s26 }
   0xb   :  { %183 = vmatpush.msra.mxu2 %v776_v4  ;;  %251 = vmatpush.msra.mxu3 %v776_v4  ;;  %v857_v13 = vld [vmem:[%s996_s3 + $0x10] sm:$0xff]  ;;  %v866_v14 = vld [vmem:[%s996_s3 + $0x8] sm:$0xff]  ;;  %v875_v15 = vld [vmem:[%s996_s3] sm:$0xff] }
   0xc   :  { %51 = vmatpush.msra.mxu0 %v785_v5  ;;  %116 = vmatpush.msra.mxu1 %v785_v5  ;;  %v25_v16 = vld [vmem:[%s994_s1] sm:$0xff]  ;;  %v607_v38 = vld [vmem:[%s993_s0 + $0x8] sm:$0xff]  ;;  %v609_v56 = vld [vmem:[%s993_s0 + $0x10] sm:$0xff] }
   0xd   :  { %184 = vmatpush.msra.mxu2 %v785_v5  ;;  %252 = vmatpush.msra.mxu3 %v785_v5  ;;  %v27_v17 = vld [vmem:[%s995_s2] sm:$0xff] }
   0xe   :  { %52 = vmatpush.msra.mxu0 %v794_v6  ;;  %117 = vmatpush.msra.mxu1 %v794_v6  ;;  %v67_v18 = vmul.f32 0.5, %v27_v17  ;;  %v69_v20 = vld [vmem:[%s993_s0] sm:$0xff] }
   0xf   :  { %185 = vmatpush.msra.mxu2 %v794_v6  ;;  %253 = vmatpush.msra.mxu3 %v794_v6 }
  0x10   :  { %53 = vmatpush.msra.mxu0 %v803_v7  ;;  %118 = vmatpush.msra.mxu1 %v803_v7 }
  0x11   :  { %186 = vmatpush.msra.mxu2 %v803_v7  ;;  %254 = vmatpush.msra.mxu3 %v803_v7 }
  0x12   :  { %54 = vmatpush.msra.mxu0 %v812_v8  ;;  %119 = vmatpush.msra.mxu1 %v812_v8 }
  0x13   :  { %187 = vmatpush.msra.mxu2 %v812_v8  ;;  %255 = vmatpush.msra.mxu3 %v812_v8 }
  0x14   :  { %55 = vmatpush.msra.mxu0 %v821_v9  ;;  %120 = vmatpush.msra.mxu1 %v821_v9 }
  0x15   :  { %188 = vmatpush.msra.mxu2 %v821_v9  ;;  %256 = vmatpush.msra.mxu3 %v821_v9 }
  0x16   :  { %56 = vmatpush.msra.mxu0 %v830_v10  ;;  %121 = vmatpush.msra.mxu1 %v830_v10 }
  0x17   :  { %189 = vmatpush.msra.mxu2 %v830_v10  ;;  %257 = vmatpush.msra.mxu3 %v830_v10 }
  0x18   :  { %57 = vmatpush.msra.mxu0 %v839_v11  ;;  %122 = vmatpush.msra.mxu1 %v839_v11 }
  0x19   :  { %190 = vmatpush.msra.mxu2 %v839_v11  ;;  %258 = vmatpush.msra.mxu3 %v839_v11 }
  0x1a   :  { %58 = vmatpush.msra.mxu0 %v848_v12  ;;  %123 = vmatpush.msra.mxu1 %v848_v12 }
  0x1b   :  { %191 = vmatpush.msra.mxu2 %v848_v12  ;;  %259 = vmatpush.msra.mxu3 %v848_v12 }
  0x1c   :  { %59 = vmatpush.msra.mxu0 %v857_v13  ;;  %124 = vmatpush.msra.mxu1 %v857_v13 }
  0x1d   :  { %192 = vmatpush.msra.mxu2 %v857_v13  ;;  %260 = vmatpush.msra.mxu3 %v857_v13 }
  0x1e   :  { %60 = vmatpush.msra.mxu0 %v866_v14  ;;  %125 = vmatpush.msra.mxu1 %v866_v14 }
  0x1f   :  { %193 = vmatpush.msra.mxu2 %v866_v14  ;;  %261 = vmatpush.msra.mxu3 %v866_v14 }
  0x20   :  { %61 = vmatpush.msra.mxu0 %v875_v15  ;;  %126 = vmatpush.msra.mxu1 %v875_v15 }
  0x21   :  { %62 = vmatmul.f32.vlgmr.msra.gmra.mxu0 %v25_v16  ;;  %194 = vmatpush.msra.mxu2 %v875_v15 }
  0x22   :  { %262 = vmatpush.msra.mxu3 %v875_v15  ;;  %315 = vmatpush.msrb.mxu0 %v746_v0 }
  0x23   :  { %383 = vmatpush.msrb.mxu1 %v746_v0  ;;  %451 = vmatpush.msrb.mxu2 %v746_v0 }
  0x24   :  { %316 = vmatpush.msrb.mxu0 %v751_v1  ;;  %519 = vmatpush.msrb.mxu3 %v746_v0 }
  0x25   :  { %384 = vmatpush.msrb.mxu1 %v751_v1  ;;  %452 = vmatpush.msrb.mxu2 %v751_v1 }
  0x26   :  { %317 = vmatpush.msrb.mxu0 %v758_v2  ;;  %520 = vmatpush.msrb.mxu3 %v751_v1 }
  0x27   :  { %385 = vmatpush.msrb.mxu1 %v758_v2  ;;  %453 = vmatpush.msrb.mxu2 %v758_v2 }
  0x28   :  { %318 = vmatpush.msrb.mxu0 %v767_v3  ;;  %521 = vmatpush.msrb.mxu3 %v758_v2 }
  0x29   :  { %386 = vmatpush.msrb.mxu1 %v767_v3  ;;  %454 = vmatpush.msrb.mxu2 %v767_v3 }
  0x2a   :  { %319 = vmatpush.msrb.mxu0 %v776_v4  ;;  %522 = vmatpush.msrb.mxu3 %v767_v3 }
  0x2b   :  { %387 = vmatpush.msrb.mxu1 %v776_v4  ;;  %455 = vmatpush.msrb.mxu2 %v776_v4 }
  0x2c   :  { %320 = vmatpush.msrb.mxu0 %v785_v5  ;;  %523 = vmatpush.msrb.mxu3 %v776_v4 }
  0x2d   :  { %388 = vmatpush.msrb.mxu1 %v785_v5  ;;  %456 = vmatpush.msrb.mxu2 %v785_v5 }
  0x2e   :  { %321 = vmatpush.msrb.mxu0 %v794_v6  ;;  %524 = vmatpush.msrb.mxu3 %v785_v5 }
  0x2f   :  { %389 = vmatpush.msrb.mxu1 %v794_v6  ;;  %457 = vmatpush.msrb.mxu2 %v794_v6 }
  0x30   :  { %322 = vmatpush.msrb.mxu0 %v803_v7  ;;  %525 = vmatpush.msrb.mxu3 %v794_v6 }
  0x31   :  { %390 = vmatpush.msrb.mxu1 %v803_v7  ;;  %458 = vmatpush.msrb.mxu2 %v803_v7 }
  0x32   :  { %323 = vmatpush.msrb.mxu0 %v812_v8  ;;  %526 = vmatpush.msrb.mxu3 %v803_v7 }
  0x33   :  { %391 = vmatpush.msrb.mxu1 %v812_v8  ;;  %459 = vmatpush.msrb.mxu2 %v812_v8 }
  0x34   :  { %324 = vmatpush.msrb.mxu0 %v821_v9  ;;  %527 = vmatpush.msrb.mxu3 %v812_v8 }
  0x35   :  { %392 = vmatpush.msrb.mxu1 %v821_v9  ;;  %460 = vmatpush.msrb.mxu2 %v821_v9 }
  0x36   :  { %325 = vmatpush.msrb.mxu0 %v830_v10  ;;  %528 = vmatpush.msrb.mxu3 %v821_v9 }
  0x37   :  { %393 = vmatpush.msrb.mxu1 %v830_v10  ;;  %461 = vmatpush.msrb.mxu2 %v830_v10 }
  0x38   :  { %326 = vmatpush.msrb.mxu0 %v839_v11  ;;  %529 = vmatpush.msrb.mxu3 %v830_v10  ;;  %v611_v10 = vld [vmem:[%s993_s0 + $0x18] sm:$0xff] }
  0x39   :  { %394 = vmatpush.msrb.mxu1 %v839_v11  ;;  %462 = vmatpush.msrb.mxu2 %v839_v11 }
  0x3a   :  { %327 = vmatpush.msrb.mxu0 %v848_v12  ;;  %530 = vmatpush.msrb.mxu3 %v839_v11 }
  0x3b   :  { %395 = vmatpush.msrb.mxu1 %v848_v12  ;;  %463 = vmatpush.msrb.mxu2 %v848_v12 }
  0x3c   :  { %328 = vmatpush.msrb.mxu0 %v857_v13  ;;  %531 = vmatpush.msrb.mxu3 %v848_v12 }
  0x3d   :  { %396 = vmatpush.msrb.mxu1 %v857_v13  ;;  %464 = vmatpush.msrb.mxu2 %v857_v13 }
  0x3e   :  { %329 = vmatpush.msrb.mxu0 %v866_v14  ;;  %532 = vmatpush.msrb.mxu3 %v857_v13 }
  0x3f   :  { %397 = vmatpush.msrb.mxu1 %v866_v14  ;;  %465 = vmatpush.msrb.mxu2 %v866_v14 }
  0x40   :  { %330 = vmatpush.msrb.mxu0 %v875_v15  ;;  %533 = vmatpush.msrb.mxu3 %v866_v14 }
  0x41   :  { %398 = vmatpush.msrb.mxu1 %v875_v15  ;;  %466 = vmatpush.msrb.mxu2 %v875_v15 }
  0x42   :  { %534 = vmatpush.msrb.mxu3 %v875_v15 }
  0x9e   :  { %v63_v19 = vpop.f32.mrf.mxu0 }
  0x9f   :  { %v68_v21 = vadd.f32 %v67_v18, %v63_v19 }
  0xa1   :  { %v70_v22 = vadd.f32 %v69_v20, %v68_v21 }
  0xa3   :  { %v606_v23 = vmul.f32 -1.442695, %v70_v22  ;;  %93 = vst [vmem:[#allocation6] sm:$0xff] %v70_v22  ;;  %v132_v36 = vmul.f32 0.5, %v70_v22 }
  0xa5   :  { %625 = vpow2.f32 %v606_v23 }
  0xab   :  { %v626_v24 = vpop.eup %625 }
  0xac   :  { %v74_v25 = vadd.f32 1.0, %v626_v24 }
  0xae   :  { %627 = vrcp.f32 %v74_v25  ;;  %v86_v29 = vand.u32 2147483648, %v74_v25  ;;  %v84_v31 = vand.u32 2147483647, %v74_v25  ;;  %vm80_vm1 = vweird.f32 %v74_v25 }
  0xb0   :  { %v87_v33 = vor.u32 1.1754944e-38, %v86_v29  ;;  %vm85_vm3 = vcmp.eq.f32.partialorder %v84_v31, 8.507059e+37 }
  0xb4   :  { %v628_v26 = vpop.eup %627 }
  0xb5   :  { %v76_v27 = vmul.f32 %v628_v26, %v74_v25  ;;  %vm81_vm0 = vweird.f32 %v628_v26 }
  0xb6   :  { %vm82_vm2 = vmor %vm80_vm1, %vm81_vm0 }
  0xb7   :  { %v77_v28 = vsub.f32 1.0, %v76_v27 }
  0xb9   :  { %v78_v30 = vmul.f32 %v628_v26, %v77_v28  ;;  %v613_v28 = vld [vmem:[%s993_s0 + $0x20] sm:$0xff] }
  0xbb   :  { %v79_v32 = vadd.f32 %v628_v26, %v78_v30 }
  0xbd   :  { %v83_v34 = vsel %vm82_vm2, %v628_v26, %v79_v32 }
  0xbe   :  { %v88_v35 = vsel %vm85_vm3, %v87_v33, %v83_v34 }
  0xbf   :  { %92 = vst [vmem:[#allocation4] sm:$0xff] %v88_v35  ;;  %127 = vmatmul.f32.vlgmr.msra.gmra.mxu1 %v88_v35 }
 0x13c   :  { %v128_v37 = vpop.f32.mrf.mxu1 }
 0x13d   :  { %v133_v39 = vadd.f32 %v132_v36, %v128_v37 }
 0x13f   :  { %v136_v40 = vadd.f32 %v607_v38, %v133_v39 }
 0x141   :  { %v608_v41 = vmul.f32 -1.442695, %v136_v40  ;;  %161 = vst [vmem:[#allocation6 + $0x8] sm:$0xff] %v136_v40  ;;  %v200_v54 = vmul.f32 0.5, %v136_v40 }
 0x143   :  { %629 = vpow2.f32 %v608_v41 }
 0x149   :  { %v630_v42 = vpop.eup %629 }
 0x14a   :  { %v140_v43 = vadd.f32 1.0, %v630_v42 }
 0x14c   :  { %631 = vrcp.f32 %v140_v43  ;;  %v152_v47 = vand.u32 2147483648, %v140_v43  ;;  %v150_v49 = vand.u32 2147483647, %v140_v43  ;;  %vm146_vm5 = vweird.f32 %v140_v43 }
 0x14e   :  { %v153_v51 = vor.u32 1.1754944e-38, %v152_v47  ;;  %vm151_vm7 = vcmp.eq.f32.partialorder %v150_v49, 8.507059e+37 }
 0x152   :  { %v632_v44 = vpop.eup %631 }
 0x153   :  { %v142_v45 = vmul.f32 %v632_v44, %v140_v43  ;;  %vm147_vm4 = vweird.f32 %v632_v44 }
 0x154   :  { %vm148_vm6 = vmor %vm146_vm5, %vm147_vm4 }
 0x155   :  { %v143_v46 = vsub.f32 1.0, %v142_v45 }
 0x157   :  { %v144_v48 = vmul.f32 %v632_v44, %v143_v46  ;;  %v615_v46 = vld [vmem:[%s993_s0 + $0x28] sm:$0xff] }
 0x159   :  { %v145_v50 = vadd.f32 %v632_v44, %v144_v48 }
 0x15b   :  { %v149_v52 = vsel %vm148_vm6, %v632_v44, %v145_v50 }
 0x15c   :  { %v154_v53 = vsel %vm151_vm7, %v153_v51, %v149_v52 }
 0x15d   :  { %159 = vst [vmem:[#allocation4 + $0x8] sm:$0xff] %v154_v53  ;;  %195 = vmatmul.f32.vlgmr.msra.gmra.mxu2 %v154_v53 }
 0x1e0   :  { %v196_v55 = vpop.f32.mrf.mxu2 }
 0x1e1   :  { %v201_v57 = vadd.f32 %v200_v54, %v196_v55 }
 0x1e3   :  { %v204_v58 = vadd.f32 %v609_v56, %v201_v57 }
 0x1e5   :  { %v610_v59 = vmul.f32 -1.442695, %v204_v58  ;;  %229 = vst [vmem:[#allocation6 + $0x10] sm:$0xff] %v204_v58  ;;  %v268_v8 = vmul.f32 0.5, %v204_v58 }
 0x1e7   :  { %633 = vpow2.f32 %v610_v59 }
 0x1ed   :  { %v634_v60 = vpop.eup %633 }
 0x1ee   :  { %v208_v61 = vadd.f32 1.0, %v634_v60 }
 0x1f0   :  { %635 = vrcp.f32 %v208_v61  ;;  %v220_v1 = vand.u32 2147483648, %v208_v61  ;;  %v218_v3 = vand.u32 2147483647, %v208_v61  ;;  %vm214_vm9 = vweird.f32 %v208_v61 }
 0x1f2   :  { %v221_v5 = vor.u32 1.1754944e-38, %v220_v1  ;;  %vm219_vm11 = vcmp.eq.f32.partialorder %v218_v3, 8.507059e+37 }
 0x1f6   :  { %v636_v62 = vpop.eup %635 }
 0x1f7   :  { %v210_v63 = vmul.f32 %v636_v62, %v208_v61  ;;  %vm215_vm8 = vweird.f32 %v636_v62 }
 0x1f8   :  { %vm216_vm10 = vmor %vm214_vm9, %vm215_vm8 }
 0x1f9   :  { %v211_v0 = vsub.f32 1.0, %v210_v63 }
 0x1fb   :  { %v212_v2 = vmul.f32 %v636_v62, %v211_v0  ;;  %v617_v0 = vld [vmem:[%s993_s0 + $0x30] sm:$0xff] }
 0x1fd   :  { %v213_v4 = vadd.f32 %v636_v62, %v212_v2 }
 0x1ff   :  { %v217_v6 = vsel %vm216_vm10, %v636_v62, %v213_v4 }
 0x200   :  { %v222_v7 = vsel %vm219_vm11, %v221_v5, %v217_v6 }
 0x201   :  { %227 = vst [vmem:[#allocation4 + $0x10] sm:$0xff] %v222_v7  ;;  %263 = vmatmul.f32.vlgmr.msra.gmra.mxu3 %v222_v7 }
 0x284   :  { %v264_v9 = vpop.f32.mrf.mxu3 }
 0x285   :  { %v269_v11 = vadd.f32 %v268_v8, %v264_v9 }
 0x287   :  { %v272_v12 = vadd.f32 %v611_v10, %v269_v11 }
 0x289   :  { %v612_v13 = vmul.f32 -1.442695, %v272_v12  ;;  %297 = vst [vmem:[#allocation6 + $0x18] sm:$0xff] %v272_v12  ;;  %v336_v26 = vmul.f32 0.5, %v272_v12 }
 0x28b   :  { %637 = vpow2.f32 %v612_v13 }
 0x291   :  { %v638_v14 = vpop.eup %637 }
 0x292   :  { %v276_v15 = vadd.f32 1.0, %v638_v14 }
 0x294   :  { %639 = vrcp.f32 %v276_v15  ;;  %v288_v19 = vand.u32 2147483648, %v276_v15  ;;  %v286_v21 = vand.u32 2147483647, %v276_v15  ;;  %vm282_vm13 = vweird.f32 %v276_v15 }
 0x296   :  { %v289_v23 = vor.u32 1.1754944e-38, %v288_v19  ;;  %vm287_vm15 = vcmp.eq.f32.partialorder %v286_v21, 8.507059e+37 }
 0x29a   :  { %v640_v16 = vpop.eup %639 }
 0x29b   :  { %v278_v17 = vmul.f32 %v640_v16, %v276_v15  ;;  %vm283_vm12 = vweird.f32 %v640_v16 }
 0x29c   :  { %vm284_vm14 = vmor %vm282_vm13, %vm283_vm12 }
 0x29d   :  { %v279_v18 = vsub.f32 1.0, %v278_v17 }
 0x29f   :  { %v280_v20 = vmul.f32 %v640_v16, %v279_v18  ;;  %v619_v18 = vld [vmem:[%s993_s0 + $0x38] sm:$0xff]  ;;  %s712_s0 = smov [#allocation4]  }
 0x2a0   :  { %s574_s5 = sshll.u32 %s712_s0, 4  ;;  %s575_s5 = int_to_ptr.vmem [resolvable:$true] %s574_s5 }
 0x2a1   :  { %v281_v22 = vadd.f32 %v640_v16, %v280_v20 }
 0x2a3   :  { %v285_v24 = vsel %vm284_vm14, %v640_v16, %v281_v22 }
 0x2a4   :  { %v290_v25 = vsel %vm287_vm15, %v289_v23, %v285_v24 }
 0x2a5   :  { %295 = vst [vmem:[#allocation4 + $0x18] sm:$0xff] %v290_v25  ;;  %331 = vmatmul.f32.vlgmr.msrb.gmra.mxu0 %v290_v25 }
 0x322   :  { %v332_v27 = vpop.f32.mrf.mxu0 }
 0x323   :  { %v337_v29 = vadd.f32 %v336_v26, %v332_v27 }
 0x325   :  { %v340_v30 = vadd.f32 %v613_v28, %v337_v29 }
 0x327   :  { %v614_v31 = vmul.f32 -1.442695, %v340_v30  ;;  %365 = vst [vmem:[#allocation6 + $0x20] sm:$0xff] %v340_v30  ;;  %v404_v44 = vmul.f32 0.5, %v340_v30 }
 0x329   :  { %641 = vpow2.f32 %v614_v31 }
 0x32f   :  { %v642_v32 = vpop.eup %641 }
 0x330   :  { %v344_v33 = vadd.f32 1.0, %v642_v32 }
 0x332   :  { %643 = vrcp.f32 %v344_v33  ;;  %v356_v37 = vand.u32 2147483648, %v344_v33  ;;  %v354_v39 = vand.u32 2147483647, %v344_v33  ;;  %vm350_vm1 = vweird.f32 %v344_v33 }
 0x334   :  { %v357_v41 = vor.u32 1.1754944e-38, %v356_v37  ;;  %vm355_vm3 = vcmp.eq.f32.partialorder %v354_v39, 8.507059e+37 }
 0x338   :  { %v644_v34 = vpop.eup %643 }
 0x339   :  { %v346_v35 = vmul.f32 %v644_v34, %v344_v33  ;;  %vm351_vm0 = vweird.f32 %v644_v34 }
 0x33a   :  { %vm352_vm2 = vmor %vm350_vm1, %vm351_vm0 }
 0x33b   :  { %v347_v36 = vsub.f32 1.0, %v346_v35 }
 0x33d   :  { %v348_v38 = vmul.f32 %v644_v34, %v347_v36 }
 0x33f   :  { %v349_v40 = vadd.f32 %v644_v34, %v348_v38 }
 0x341   :  { %v353_v42 = vsel %vm352_vm2, %v644_v34, %v349_v40 }
 0x342   :  { %v358_v43 = vsel %vm355_vm3, %v357_v41, %v353_v42 }
 0x343   :  { %363 = vst [vmem:[#allocation4 + $0x20] sm:$0xff] %v358_v43  ;;  %399 = vmatmul.f32.vlgmr.msrb.gmra.mxu1 %v358_v43 }
 0x3c0   :  { %v400_v45 = vpop.f32.mrf.mxu1 }
 0x3c1   :  { %v405_v47 = vadd.f32 %v404_v44, %v400_v45 }
 0x3c3   :  { %v408_v48 = vadd.f32 %v615_v46, %v405_v47 }
 0x3c5   :  { %v616_v49 = vmul.f32 -1.442695, %v408_v48  ;;  %433 = vst [vmem:[#allocation6 + $0x28] sm:$0xff] %v408_v48  ;;  %v472_v62 = vmul.f32 0.5, %v408_v48 }
 0x3c7   :  { %645 = vpow2.f32 %v616_v49 }
 0x3cd   :  { %v646_v50 = vpop.eup %645 }
 0x3ce   :  { %v412_v51 = vadd.f32 1.0, %v646_v50 }
 0x3d0   :  { %647 = vrcp.f32 %v412_v51  ;;  %v424_v55 = vand.u32 2147483648, %v412_v51  ;;  %v422_v57 = vand.u32 2147483647, %v412_v51  ;;  %vm418_vm5 = vweird.f32 %v412_v51 }
 0x3d2   :  { %v425_v59 = vor.u32 1.1754944e-38, %v424_v55  ;;  %vm423_vm7 = vcmp.eq.f32.partialorder %v422_v57, 8.507059e+37 }
 0x3d6   :  { %v648_v52 = vpop.eup %647 }
 0x3d7   :  { %v414_v53 = vmul.f32 %v648_v52, %v412_v51  ;;  %vm419_vm4 = vweird.f32 %v648_v52 }
 0x3d8   :  { %vm420_vm6 = vmor %vm418_vm5, %vm419_vm4 }
 0x3d9   :  { %v415_v54 = vsub.f32 1.0, %v414_v53 }
 0x3db   :  { %v416_v56 = vmul.f32 %v648_v52, %v415_v54 }
 0x3dd   :  { %v417_v58 = vadd.f32 %v648_v52, %v416_v56 }
 0x3df   :  { %v421_v60 = vsel %vm420_vm6, %v648_v52, %v417_v58 }
 0x3e0   :  { %v426_v61 = vsel %vm423_vm7, %v425_v59, %v421_v60 }
 0x3e1   :  { %431 = vst [vmem:[#allocation4 + $0x28] sm:$0xff] %v426_v61  ;;  %467 = vmatmul.f32.vlgmr.msrb.gmra.mxu2 %v426_v61 }
 0x464   :  { %v468_v63 = vpop.f32.mrf.mxu2 }
 0x465   :  { %v473_v1 = vadd.f32 %v472_v62, %v468_v63 }
 0x467   :  { %v476_v2 = vadd.f32 %v617_v0, %v473_v1 }
 0x469   :  { %v618_v3 = vmul.f32 -1.442695, %v476_v2  ;;  %501 = vst [vmem:[#allocation6 + $0x30] sm:$0xff] %v476_v2  ;;  %v540_v16 = vmul.f32 0.5, %v476_v2 }
 0x46b   :  { %649 = vpow2.f32 %v618_v3 }
 0x471   :  { %v650_v4 = vpop.eup %649 }
 0x472   :  { %v480_v5 = vadd.f32 1.0, %v650_v4 }
 0x474   :  { %651 = vrcp.f32 %v480_v5  ;;  %v492_v9 = vand.u32 2147483648, %v480_v5  ;;  %v490_v11 = vand.u32 2147483647, %v480_v5  ;;  %vm486_vm9 = vweird.f32 %v480_v5 }
 0x476   :  { %v493_v13 = vor.u32 1.1754944e-38, %v492_v9  ;;  %vm491_vm11 = vcmp.eq.f32.partialorder %v490_v11, 8.507059e+37 }
 0x47a   :  { %v652_v6 = vpop.eup %651 }
 0x47b   :  { %v482_v7 = vmul.f32 %v652_v6, %v480_v5  ;;  %vm487_vm8 = vweird.f32 %v652_v6 }
 0x47c   :  { %vm488_vm10 = vmor %vm486_vm9, %vm487_vm8 }
 0x47d   :  { %v483_v8 = vsub.f32 1.0, %v482_v7 }
 0x47f   :  { %v484_v10 = vmul.f32 %v652_v6, %v483_v8 }
 0x481   :  { %v485_v12 = vadd.f32 %v652_v6, %v484_v10 }
 0x483   :  { %v489_v14 = vsel %vm488_vm10, %v652_v6, %v485_v12 }
 0x484   :  { %v494_v15 = vsel %vm491_vm11, %v493_v13, %v489_v14 }
 0x485   :  { %499 = vst [vmem:[#allocation4 + $0x30] sm:$0xff] %v494_v15  ;;  %535 = vmatmul.f32.vlgmr.msrb.gmra.mxu3 %v494_v15 }
 0x508   :  { %v536_v17 = vpop.f32.mrf.mxu3 }
 0x509   :  { %v541_v19 = vadd.f32 %v540_v16, %v536_v17 }
 0x50b   :  { %v544_v20 = vadd.f32 %v619_v18, %v541_v19 }
 0x50d   :  { %v620_v21 = vmul.f32 -1.442695, %v544_v20  ;;  %569 = vst [vmem:[#allocation6 + $0x38] sm:$0xff] %v544_v20 }
 0x50e   :  { %595 = dma.vmem_to_hbm [thread:$0]  %s588_s18, 1024, %s590_s21, [#allocation7], %s710_s22, %s710_s22, %s711_s23  }
 0x50f   :  { %653 = vpow2.f32 %v620_v21 }
 0x515   :  { %v654_v22 = vpop.eup %653 }
 0x516   :  { %v548_v23 = vadd.f32 1.0, %v654_v22 }
 0x518   :  { %655 = vrcp.f32 %v548_v23  ;;  %v560_v27 = vand.u32 2147483648, %v548_v23  ;;  %v558_v29 = vand.u32 2147483647, %v548_v23  ;;  %vm554_vm13 = vweird.f32 %v548_v23 }
 0x51a   :  { %v561_v31 = vor.u32 1.1754944e-38, %v560_v27  ;;  %vm559_vm15 = vcmp.eq.f32.partialorder %v558_v29, 8.507059e+37 }
 0x51e   :  { %v656_v24 = vpop.eup %655 }
 0x51f   :  { %v550_v25 = vmul.f32 %v656_v24, %v548_v23  ;;  %vm555_vm12 = vweird.f32 %v656_v24 }
 0x520   :  { %vm556_vm14 = vmor %vm554_vm13, %vm555_vm12 }
 0x521   :  { %v551_v26 = vsub.f32 1.0, %v550_v25 }
 0x523   :  { %v552_v28 = vmul.f32 %v656_v24, %v551_v26 }
 0x525   :  { %v553_v30 = vadd.f32 %v656_v24, %v552_v28 }
 0x527   :  { %v557_v32 = vsel %vm556_vm14, %v656_v24, %v553_v30 }
 0x528   :  { %v562_v33 = vsel %vm559_vm15, %v561_v31, %v557_v32 }
 0x529   :  { %567 = vst [vmem:[#allocation4 + $0x38] sm:$0xff] %v562_v33 }
 0x52a   :  { %582 = dma.vmem_to_hbm [thread:$0]  %s575_s5, 1024, %s577_s26, [#allocation5], %s710_s22, %s710_s22, %s711_s23  }
 0x52b   :  { %705 = dma.done.wait [#allocation5], 1024  }
 0x52c   :  { %706 = vsyncadd [#allocation5], 4294966272 }
 0x52d   :  { %707 = dma.done.wait [#allocation7], 1024  }
 0x52e   :  { %708 = vsyncadd [#allocation7], 4294966272 }
 0x52f   :  { %604 = vsyncpa [#allocation5], 1 }
 0x530   :  { %605 = vsyncpa [#allocation7], 1 }

</bundles_post_ra>
